<compile_context>
chip_gen: v7x
topology: tpu7x:2x2x1
jax: 0.10.0
libtpu: 0.0.40
codegen_flags: <defaults>
</compile_context>

<pallas_src>
import math

import jax
import jax.numpy as jnp
from jax.experimental import pallas as pl
from jax.experimental.pallas import tpu as pltpu


def _normalize_kernel(x_ref, mean_ref, std_ref, o_ref):
    # Elementwise hot path: (x - mean) * (1/std), broadcast (1, tf) over rows.
    x = x_ref[...].astype(jnp.float32)                  # (tb, tf)
    m = mean_ref[...].astype(jnp.float32)               # (1, tf)
    inv = 1.0 / std_ref[...].astype(jnp.float32)        # (1, tf) exact reciprocal per tile
    o_ref[...] = ((x - m) * inv).astype(o_ref.dtype)


def _sublane_align(dtype):
    # f32 -> 8, bf16 -> 16, int8/fp8 -> 32 (sub-32-bit dtypes pack along sublanes).
    return max(8, 32 // jnp.dtype(dtype).itemsize)


def _vmem_budgets():
    # (scoped VMEM limit, per-buffer tile budget); generation-gated when the
    # hardware can be queried: v5e/v6e have 128 MiB VMEM per TensorCore,
    # v7x only 64 MiB, so default to the conservative setting.
    vmem_limit = 56 * 1024 * 1024
    tile_bytes = 12 * 1024 * 1024
    try:
        cap = pltpu.get_tpu_info().vmem_capacity_bytes
        if cap is not None and cap >= 120 * 1024 * 1024:
            vmem_limit = 100 * 1024 * 1024
            tile_bytes = 20 * 1024 * 1024
    except Exception:
        pass  # keep conservative defaults if the query is unavailable
    return vmem_limit, tile_bytes


def _pick_feature_tile(Fp, align, itemsize, tile_bytes):
    # Single feature tile unless even an `align`-row tile would blow the budget.
    if Fp <= 128 or align * Fp * itemsize <= tile_bytes:
        return Fp
    tf = (tile_bytes // (align * itemsize)) // 128 * 128
    return int(max(128, min(tf, Fp)))


def _pick_row_tile(Bp, rows_budget, align):
    """Largest sublane-aligned row tile under budget, with >=2 grid steps when
    possible (v7x megacore sharding + pipelining), preferring a tile that
    divides Bp so there is no ragged masked final block."""
    if Bp <= align:
        return Bp
    rows_budget = max(align, (rows_budget // align) * align)
    if Bp >= 2 * align:
        # Cap so there are at least 2 row tiles.
        half = -(-((Bp + 1) // 2) // align) * align
        rows_budget = min(rows_budget, half)
    tb = max(align, min(rows_budget, (Bp // align) * align))
    # Prefer a divisor of Bp; only search down to tb/2 so we never over-shrink.
    t = tb
    while t >= max(align, tb // 2):
        if Bp % t == 0:
            return t
        t -= align
    return tb


def normalize(x, mean, std, *, allow_bypass=True):
    """Pallas equivalent of Normalize.forward: (x - mean) / std.

    x:    [B, F]
    mean: [F]
    std:  [F]
    """
    B, F = x.shape
    dtype = x.dtype
    itemsize = jnp.dtype(dtype).itemsize

    # ---- Tiny-input bypass: let XLA fuse it into the consumer op ----
    if allow_bypass and B * F * itemsize < 256 * 1024:
        return (x - mean.reshape(1, F)) / std.reshape(1, F)

    vmem_limit, tile_bytes = _vmem_budgets()
    align = _sublane_align(dtype)

    # ---- Lane packing: make the last dim a multiple of 128 (pad rows if needed) ----
    k = 1
    xp = x
    Bq = B
    if F % 128 != 0 and F * itemsize <= 64 * 1024:
        k = 128 // math.gcd(F, 128)          # smallest k with (k*F) % 128 == 0
        B_pad = -(-B // k) * k
        if B_pad != B:
            xp = jnp.concatenate(
                [x, jnp.zeros((B_pad - B, F), dtype=dtype)], axis=0)
        Bq = B_pad
    Bp, Fp = Bq // k, k * F
    xp = xp.reshape(Bp, Fp)

    mean2d = jnp.reshape(mean, (1, F))
    std2d = jnp.reshape(std, (1, F))
    if k > 1:
        mean2d = jnp.tile(mean2d, (1, k))    # (1, Fp)
        std2d = jnp.tile(std2d, (1, k))      # (1, Fp)

    # ---- Tile sizes: big streaming tiles, 2-D grid guards very wide Fp ----
    tf = _pick_feature_tile(Fp, align, itemsize, tile_bytes)
    rows_budget = max(1, tile_bytes // max(tf * itemsize, 1))
    tb = _pick_row_tile(Bp, rows_budget, align)

    grid = (pl.cdiv(Bp, tb), pl.cdiv(Fp, tf))

    out = pl.pallas_call(
        _normalize_kernel,
        out_shape=jax.ShapeDtypeStruct((Bp, Fp), dtype),
        grid_spec=pltpu.PrefetchScalarGridSpec(
            num_scalar_prefetch=0,
            grid=grid,
            in_specs=[
                pl.BlockSpec((tb, tf), lambda i, j: (i, j)),   # x tile
                pl.BlockSpec((1, tf), lambda i, j: (0, j)),    # mean (feature-tiled)
                pl.BlockSpec((1, tf), lambda i, j: (0, j)),    # std  (feature-tiled)
            ],
            out_specs=pl.BlockSpec((tb, tf), lambda i, j: (i, j)),
        ),
        compiler_params=pltpu.CompilerParams(
            dimension_semantics=("parallel", "parallel"),
            vmem_limit_bytes=vmem_limit,
        ),
    )(xp, mean2d, std2d)

    out = out.reshape(Bq, F)
    if Bq != B:
        out = out[:B]                        # drop zero-padded rows
    return out


if __name__ == "__main__":
    key = jax.random.PRNGKey(0)
    kx, km, ks = jax.random.split(key, 3)

    # Actuator-network-style small shape: batch=8, features=32.
    B, F = 8, 32
    x = jax.random.normal(kx, (B, F), dtype=jnp.float32)
    mean = jax.random.normal(km, (F,), dtype=jnp.float32)
    std = jax.random.uniform(ks, (F,), dtype=jnp.float32, minval=0.5, maxval=2.0)
    ref = (x - mean[None, :]) / std[None, :]

    # Small shape: both the size-bypass path and the Pallas kernel path.
    out_bypass = jax.block_until_ready(normalize(x, mean, std))
    out_kernel = jax.block_until_ready(normalize(x, mean, std, allow_bypass=False))
    assert jnp.allclose(out_bypass, ref, atol=1e-6, rtol=1e-6), "bypass mismatch"
    assert jnp.allclose(out_kernel, ref, atol=1e-6, rtol=1e-6), "kernel mismatch"

    # Larger cases that stream tiles through the grid, including a batch that
    # is NOT a multiple of the lane-packing factor (exercises row padding).
    for B2 in (4096, 4090):
        x2 = jax.random.normal(jax.random.PRNGKey(1), (B2, F), dtype=jnp.float32)
        out2 = jax.block_until_ready(normalize(x2, mean, std))
        ref2 = (x2 - mean[None, :]) / std[None, :]
        assert jnp.allclose(out2, ref2, atol=1e-6, rtol=1e-6), f"mismatch B={B2}"

    print("KERNEL_OK")
</pallas_src>

<mosaic_0001>
module attributes {stable_mosaic.version = 11 : i64} {
  func.func @_normalize_kernel(%arg0: i32, %arg1: i32, %arg2: memref<2x128xf32, #tpu.memory_space<vmem>>, %arg3: memref<1x128xf32, #tpu.memory_space<vmem>>, %arg4: memref<1x128xf32, #tpu.memory_space<vmem>>, %arg5: memref<2x128xf32, #tpu.memory_space<vmem>>) attributes {dimension_semantics = [#tpu.dimension_semantics<parallel>, #tpu.dimension_semantics<parallel>], iteration_bounds = array<i64: 1, 1>, scalar_prefetch = 0 : i64, scratch_operands = 0 : i64, tpu.core_type = #tpu.core_type<tc>, window_params = [{transform_indices = @transform_0, window_bounds = array<i64: 2, 128>}, {transform_indices = @transform_1, window_bounds = array<i64: 1, 128>}, {transform_indices = @transform_2, window_bounds = array<i64: 1, 128>}, {transform_indices = @transform_3, window_bounds = array<i64: 2, 128>}]} {
    %c0 = arith.constant 0 : index
    %c0_0 = arith.constant 0 : index
    %0 = vector.load %arg2[%c0, %c0_0] : memref<2x128xf32, #tpu.memory_space<vmem>>, vector<2x128xf32>
    %c0_1 = arith.constant 0 : index
    %c0_2 = arith.constant 0 : index
    %1 = vector.load %arg3[%c0_1, %c0_2] : memref<1x128xf32, #tpu.memory_space<vmem>>, vector<1x128xf32>
    %c0_3 = arith.constant 0 : index
    %c0_4 = arith.constant 0 : index
    %2 = vector.load %arg4[%c0_3, %c0_4] : memref<1x128xf32, #tpu.memory_space<vmem>>, vector<1x128xf32>
    %cst = arith.constant 1.000000e+00 : f32
    %3 = vector.broadcast %cst : f32 to vector<1x128xf32>
    %4 = arith.divf %3, %2 : vector<1x128xf32>
    %5 = vector.broadcast %1 : vector<1x128xf32> to vector<2x128xf32>
    %6 = arith.subf %0, %5 : vector<2x128xf32>
    %7 = vector.broadcast %4 : vector<1x128xf32> to vector<2x128xf32>
    %8 = arith.mulf %6, %7 : vector<2x128xf32>
    %c0_5 = arith.constant 0 : index
    %c0_6 = arith.constant 0 : index
    %9 = vector.load %arg5[%c0_5, %c0_6] : memref<2x128xf32, #tpu.memory_space<vmem>>, vector<2x128xf32>
    tpu.vector_store %arg5[%c0_5, %c0_6], %8 {strides = array<i32>} : memref<2x128xf32, #tpu.memory_space<vmem>>, vector<2x128xf32>,
    return
  }
  func.func @transform_0(%arg0: i32, %arg1: i32) -> (i32, i32) {
    %c0_i32 = arith.constant 0 : i32
    return %arg0, %arg1 : i32, i32
  }
  func.func @transform_1(%arg0: i32, %arg1: i32) -> (i32, i32) {
    %c0_i32 = arith.constant 0 : i32
    %c0_i32_0 = arith.constant 0 : i32
    return %c0_i32, %arg1 : i32, i32
  }
  func.func @transform_2(%arg0: i32, %arg1: i32) -> (i32, i32) {
    %c0_i32 = arith.constant 0 : i32
    %c0_i32_0 = arith.constant 0 : i32
    return %c0_i32, %arg1 : i32, i32
  }
  func.func @transform_3(%arg0: i32, %arg1: i32) -> (i32, i32) {
    %c0_i32 = arith.constant 0 : i32
    return %arg0, %arg1 : i32, i32
  }
}

</mosaic_0001>

<bundles_post_ra>
// kernel: tpu_custom_call.1
= control target key start
LH: loop header
LB: loop body
LE: loop exit
PB: predicated region body
PF: predicated region fallthrough
CT: control target
= control target key end

     0   :  { %8 = vsyncpa [#allocation3], 0  ;;  %s167_s0 = inlined_call_operand.hbm [shape: f32[2,128], index: 0, kind: input, shape index: {}]   ;;  %s168_s1 = inlined_call_operand.vmem [shape: f32[1,128], index: 1, kind: input, shape index: {}]   ;;  %s169_s2 = inlined_call_operand.vmem [shape: f32[1,128], index: 2, kind: input, shape index: {}]   ;;  %s170_s3 = inlined_call_operand.hbm [shape: f32[2,128], index: 3, kind: output, shape index: {}]  }
   0x1   :  { %9 = vsyncpa [#allocation4], 0  ;;  %s115_s12 = smov [#allocation2]   ;;  %s67_s16 = scalar_lea.hbm %s167_s0, 32 }
   0x2   :  { %s16_s13 = sshll.u32 %s115_s12, 4  ;;  %p68_p0 = scmp.ne.s32.totalorder %s167_s0, %s67_s16  ;;  %s17_s13 = int_to_ptr.vmem [resolvable:$true] %s16_s13 }
   0x3   :  { %p71_p1 = scmp.lt.u32.totalorder %s67_s16, %s167_s0 }
   0x5   :  { %p73_p2 = pnand %p71_p1, %p68_p0 }
   0x7   :  { %76 = shalt.err (!%p73_p2)
}
   0x8   :  { %s77_s21 = scalar_lea.vmem %s17_s13, 32  ;;  %p82_p4 = scmp.lt.s32.totalorder %s17_s13, %s17_s13 }
   0x9   :  { %p78_p3 = scmp.ne.s32.totalorder %s17_s13, %s77_s21  ;;  %p83_p5 = scmp.lt.s32.totalorder %s77_s21, %s77_s21 }
   0xb   :  { %p84_p6 = por %p83_p5, %p82_p4 }
   0xd   :  { %p85_p7 = pnand %p84_p6, %p78_p3 }
   0xf   :  { %88 = shalt.err (!%p85_p7)
}
  0x10   :  { %19 = dma.hbm_to_vmem [thread:$0]  %s167_s0, 32, %s17_s13, [#allocation3]  }
  0x11   :  { %111 = dma.done.wait [#allocation3], 32  }
  0x12   :  { %112 = vsyncadd [#allocation3], 4294967264  ;;  %v29_v0 = vld [vmem:[%s169_s2] sm:$0x1]  ;;  %v40_v1 = vlaneseq  ;;  %s116_s28 = smov [#allocation5]  }
  0x13   :  { %65 = vrcp.f32 %v29_v0  ;;  %v27_v3 = vld [vmem:[#allocation2] sm:$0x3]  ;;  %s53_s29 = sshll.u32 %s116_s28, 4  ;;  %s54_s29 = int_to_ptr.vmem [resolvable:$true] %s53_s29 }
  0x14   :  { %v41_v2 = vshrl.u32 %v40_v1, 7  ;;  %v62_v4 = vld [vmem:[%s168_s1] ss:$0 sm:$0xff]  ;;  %s89_s0 = scalar_lea.vmem %s54_s29, 32  ;;  %p94_p9 = scmp.lt.s32.totalorder %s54_s29, %s54_s29 }
  0x15   :  { %v38_v6 = vsub.f32 %v27_v3, %v62_v4  ;;  %p90_p8 = scmp.ne.s32.totalorder %s54_s29, %s89_s0  ;;  %p95_p10 = scmp.lt.s32.totalorder %s89_s0, %s89_s0 }
  0x16   :  { %v42_v5 = vsub.s32 0, %v41_v2 }
  0x17   :  { %p96_p11 = por %p95_p10, %p94_p9 }
  0x19   :  { %p97_p12 = pnand %p96_p11, %p90_p8 }
  0x1d   :  { %v66_v7 = vpop.eup %65 }
  0x1e   :  { %v43_v8 = vrot.slane %v66_v7, %v42_v5 }
  0x20   :  { %v45_v9 = vmul.f32 %v43_v8, %v38_v6 }
  0x22   :  { %46 = vst [vmem:[#allocation5] sm:$0x3] %v45_v9 }
  0x23   :  { %100 = shalt.err (!%p97_p12)
}
  0x24   :  { %s101_s1 = scalar_lea.hbm %s170_s3, 32 }
  0x25   :  { %p102_p13 = scmp.ne.s32.totalorder %s170_s3, %s101_s1  ;;  %p105_p0 = scmp.lt.u32.totalorder %s101_s1, %s170_s3 }
  0x27   :  { %p107_p1 = pnand %p105_p0, %p102_p13 }
  0x29   :  { %110 = shalt.err (!%p107_p1)
}
  0x2a   :  { %56 = dma.vmem_to_hbm [thread:$0]  %s54_s29, 32, %s170_s3, [#allocation4]  }
  0x2b   :  { %113 = dma.done.wait [#allocation4], 32  }
  0x2c   :  { %114 = vsyncadd [#allocation4], 4294967264 }
  0x2d   :  { %60 = vsyncpa [#allocation3], 1 }
  0x2e   :  { %61 = vsyncpa [#allocation4], 1 }

</bundles_post_ra>
